<compile_context>
chip_gen: v5e
topology: v5e:2x2
jax: 0.10.0
libtpu: 0.0.40
codegen_flags: <defaults>
</compile_context>

<pallas_src>
import functools

import jax
import jax.numpy as jnp
from jax.experimental import pallas as pl
from jax.experimental.pallas import tpu as pltpu


# ---------------------------------------------------------------------------
# Kernel
# ---------------------------------------------------------------------------
def attention_kernel(enc_ref, hproj_ref, w1t_ref, w2_ref, out_ref, *, approx_recip):
    # enc_ref:   (L, Bt, Hp)  encoder outputs, native layout (zero-padded B / H)
    # hproj_ref: (Bt, Hp)     hidden @ W1[:, H:].T + b1  (precomputed, f32)
    # w1t_ref:   (Hp, Hp)     W1[:, :H].T zero-padded (contract enc's minor axis)
    # w2_ref:    (1, Hp)      attn2 weight row, zero-padded lanes
    # out_ref:   (Bt, L)      attention weights
    L, Bt, Hp = enc_ref.shape

    # attn1 (encoder part): one MXU matmul with M = L*Bt rows.  Bt % 8 == 0 and
    # Hp % 128 == 0 are guaranteed by the wrapper, so this reshape is a layout no-op.
    enc2d = enc_ref[...].reshape(L * Bt, Hp)
    e = jnp.dot(enc2d, w1t_ref[...], preferred_element_type=jnp.float32)   # (L*Bt, Hp) f32

    # Add per-batch hidden projection (already contains b1), then ReLU.
    e = e.reshape(L, Bt, Hp) + hproj_ref[...][None, :, :]
    e = jnp.maximum(e, 0.0)

    # attn2: VPU multiply + lane reduction (a 1-row MXU matmul would waste the MXU).
    # b2 is constant over L and cancels inside the softmax -> dropped (exact).
    # Padded H lanes are exactly zero (zero enc cols / zero w2 lanes) -> no contribution.
    s = jnp.sum(e * w2_ref[...][None, :, :], axis=-1)                      # (L, Bt)

    # Softmax over L per batch row; transpose the small score tile so the reduction runs
    # along lanes and the store is batch-major.
    s = s.T                                                                # (Bt, L)
    m = jnp.max(s, axis=-1, keepdims=True)
    p = jnp.exp(s - m)
    denom = jnp.sum(p, axis=-1, keepdims=True)
    attn = p * pl.reciprocal(denom, approx=approx_recip)
    out_ref[...] = attn.astype(out_ref.dtype)


# ---------------------------------------------------------------------------
# Tiling / chip heuristics
# ---------------------------------------------------------------------------
def _round_up(x, m):
    return (x + m - 1) // m * m


def _chip_budget():
    """(vmem_limit_bytes, multi_tensorcore) from the attached TPU generation."""
    try:
        kind = jax.devices()[0].device_kind.lower()
    except Exception:
        kind = ""
    multi_tc = ("7" in kind) or ("v4" in kind) or ("v5p" in kind)
    if "7" in kind:
        # v7x: 64 MiB VMEM per TensorCore -> leave headroom.
        return 48 << 20, multi_tc
    if ("v6" in kind) or ("v5" in kind) or ("v4" in kind) or ("lite" in kind):
        # 128 MiB physical VMEM -> raise scoped limit well past the 16/32 MiB defaults.
        return 64 << 20, multi_tc
    # Unknown backend: conservative limit, assume single TensorCore.
    return 32 << 20, False


def _batch_tile(B8, L, Hp, enc_itemsize, budget, multi_tc):
    """Pick Bt (batch rows per grid step), a multiple of 8, sized against total
    per-step VMEM (enc double-buffer + f32 matmul output + relu'd intermediate +
    hproj/out buffers), with constant weights counted once (single-buffered)."""
    per_row = (2 * L * Hp * enc_itemsize   # enc tile, double buffered
               + 2 * L * Hp * 4            # f32 matmul output + relu'd intermediate
               + 2 * Hp * 4                # hproj, double buffered
               + 2 * L * 4)                # out tile, double buffered
    fixed = Hp * Hp * 4 + Hp * 4           # constant weights (single buffer)
    avail = max(budget - fixed, 8 * per_row)
    bt = int(max(8, (avail // per_row) // 8 * 8))
    bt = min(bt, B8)
    if multi_tc and bt >= B8 and B8 >= 16:
        # Split into >= 2 grid blocks so both TensorCores get work (v7x / megacore only;
        # on single-TC v5e/v6e this would just double the per-step overhead).
        bt = max(8, _round_up(B8 // 2, 8))
    return bt


def _weight_spec(shape, single_buffer):
    index_map = lambda i: (0,) * len(shape)
    if single_buffer:
        # Constant across the grid -> the default second pipeline buffer is dead VMEM.
        return pl.BlockSpec(shape, index_map, pipeline_mode=pl.Buffered(1))
    return pl.BlockSpec(shape, index_map)


# ---------------------------------------------------------------------------
# Wrapper
# ---------------------------------------------------------------------------
def attention_forward(encoder_outputs, hidden, params, *,
                      matmul_dtype=None, approx_softmax_recip=None):
    """encoder_outputs: (L, B, H), hidden: (1, B, H) -> attention (B, 1, L).

    matmul_dtype: optional lower-precision MXU feed (e.g. jnp.bfloat16) for enc / W1e^T;
                  accumulation stays f32.  None -> use the input dtype (exact path).
    """
    L, B, H = encoder_outputs.shape
    w1, b1, w2 = params["w1"], params["b1"], params["w2"]
    # params["b2"] is a per-score constant -> cancels exactly in the softmax (dropped).

    out_dtype = encoder_outputs.dtype
    if approx_softmax_recip is None:
        approx_softmax_recip = matmul_dtype is not None

    # Pad H to the lane width (exact: zero contraction cols / zero output cols / zero
    # w2 lanes contribute nothing) and batch to a multiple of 8 so the kernel's reshape
    # and every vreg / MXU pass are fully dense.
    Hp = _round_up(max(H, 128), 128)
    B8 = _round_up(max(B, 8), 8)

    f32 = jnp.float32
    # Split the cat-linear: attn1(cat([enc, hid])) == enc @ W1[:,:H].T + hid @ W1[:,H:].T + b1.
    # The hidden/bias part is L-independent -> precompute once (tiny XLA matmul).
    w1e_t = jnp.zeros((Hp, Hp), f32).at[:H, :H].set(w1[:, :H].T.astype(f32))
    hproj = hidden[0].astype(f32) @ w1[:, H:].T.astype(f32) + b1.astype(f32)      # (B, H)
    w2r = jnp.zeros((1, Hp), f32).at[:, :H].set(w2.reshape(1, H).astype(f32))

    enc_dtype = matmul_dtype if matmul_dtype is not None else encoder_outputs.dtype
    enc_itemsize = jnp.dtype(enc_dtype).itemsize

    vmem_limit, multi_tc = _chip_budget()
    Bt = _batch_tile(B8, L, Hp, enc_itemsize, int(vmem_limit * 3 // 4), multi_tc)
    B_pad = _round_up(B8, Bt)          # every grid block is fully (zero-)defined
    grid = (B_pad // Bt,)

    enc = jnp.zeros((L, B_pad, Hp), encoder_outputs.dtype).at[:, :B, :H].set(encoder_outputs)
    enc = enc.astype(enc_dtype)        # cast in the wrapper -> enc HBM traffic halves for bf16
    w1e_t = w1e_t.astype(enc_dtype)
    hproj_p = jnp.zeros((B_pad, Hp), f32).at[:B, :H].set(hproj)

    kernel = functools.partial(attention_kernel, approx_recip=approx_softmax_recip)

    def _run(single_buffer_weights):
        return pl.pallas_call(
            kernel,
            out_shape=jax.ShapeDtypeStruct((B_pad, L), out_dtype),
            grid=grid,
            in_specs=[
                pl.BlockSpec((L, Bt, Hp), lambda i: (0, i, 0)),   # enc, native layout
                pl.BlockSpec((Bt, Hp), lambda i: (i, 0)),         # hidden projection (+ b1)
                _weight_spec((Hp, Hp), single_buffer_weights),    # W1e^T (constant)
                _weight_spec((1, Hp), single_buffer_weights),     # W2 row (constant)
            ],
            out_specs=pl.BlockSpec((Bt, L), lambda i: (i, 0)),
            compiler_params=pltpu.CompilerParams(
                dimension_semantics=("parallel",),
                vmem_limit_bytes=int(vmem_limit),
            ),
        )(enc, hproj_p, w1e_t, w2r)

    try:
        out = _run(True)
    except Exception:
        # pipeline_mode=pl.Buffered(1) unsupported on this build -> default buffering.
        out = _run(False)

    return out[:B].reshape(B, 1, L)


# ---------------------------------------------------------------------------
# Reference + init
# ---------------------------------------------------------------------------
def init_params(key, hidden_size):
    """Deterministic init mimicking nn.Linear default (uniform +/- 1/sqrt(fan_in))."""
    k1, k2, k3, k4 = jax.random.split(key, 4)
    H = hidden_size
    bound1 = 1.0 / jnp.sqrt(2.0 * H)
    bound2 = 1.0 / jnp.sqrt(1.0 * H)
    return {
        "w1": jax.random.uniform(k1, (H, 2 * H), jnp.float32, -bound1, bound1),
        "b1": jax.random.uniform(k2, (H,), jnp.float32, -bound1, bound1),
        "w2": jax.random.uniform(k3, (1, H), jnp.float32, -bound2, bound2),
        "b2": jax.random.uniform(k4, (1,), jnp.float32, -bound2, bound2),
    }


def attention_ref(encoder_outputs, hidden, params):
    """Pure-JAX reference matching the PyTorch forward exactly (including b2)."""
    L, B, H = encoder_outputs.shape
    enc = jnp.transpose(encoder_outputs, (1, 0, 2))              # (B, L, H)
    hid = jnp.transpose(jnp.tile(hidden, (L, 1, 1)), (1, 0, 2))  # (B, L, H)
    x = jnp.concatenate([enc, hid], axis=2)                      # (B, L, 2H)
    e = jnp.maximum(x @ params["w1"].T + params["b1"], 0.0)      # (B, L, H)
    s = (e @ params["w2"].T + params["b2"])[..., 0]              # (B, L)
    return jax.nn.softmax(s, axis=1)[:, None, :]                 # (B, 1, L)


# ---------------------------------------------------------------------------
# Demo / correctness check
# ---------------------------------------------------------------------------
if __name__ == "__main__":
    key = jax.random.PRNGKey(0)
    k_enc, k_hid, k_par = jax.random.split(key, 3)

    L, B, H = 8, 2, 32
    encoder_outputs = jax.random.normal(k_enc, (L, B, H), jnp.float32)
    hidden = jax.random.normal(k_hid, (1, B, H), jnp.float32)
    params = init_params(k_par, H)

    ref = attention_ref(encoder_outputs, hidden, params)

    # Exact f32 MXU path: tight tolerance.
    out = attention_forward(encoder_outputs, hidden, params)
    out = jax.block_until_ready(out)
    assert out.shape == (B, 1, L), out.shape
    assert jnp.allclose(out, ref, atol=1e-5, rtol=1e-5), "f32 path mismatch vs reference"

    # bf16 MXU feed (production default on v6e/v7x): relaxed tolerance.
    out_bf16 = attention_forward(encoder_outputs, hidden, params,
                                 matmul_dtype=jnp.bfloat16)
    out_bf16 = jax.block_until_ready(out_bf16)
    assert jnp.all(jnp.isfinite(out_bf16))
    assert jnp.allclose(out_bf16, ref, atol=2e-2, rtol=2e-2), "bf16 path mismatch"

    # Non-divisible batch: padded rows are zero-defined and sliced off; no NaN/Inf leaks.
    B2 = 5
    enc2 = jax.random.normal(k_enc, (L, B2, H), jnp.float32)
    hid2 = jax.random.normal(k_hid, (1, B2, H), jnp.float32)
    out2 = jax.block_until_ready(attention_forward(enc2, hid2, params))
    ref2 = attention_ref(enc2, hid2, params)
    assert out2.shape == (B2, 1, L)
    assert jnp.all(jnp.isfinite(out2))
    assert jnp.allclose(out2, ref2, atol=1e-5, rtol=1e-5), "non-divisible B mismatch"

    print("KERNEL_OK")
</pallas_src>

<mosaic_0001>
module attributes {stable_mosaic.version = 11 : i64} {
  func.func @attention_kernel(%arg0: i32, %arg1: memref<8x8x128xf32, #tpu.memory_space<vmem>>, %arg2: memref<8x128xf32, #tpu.memory_space<vmem>>, %arg3: memref<128x128xf32, #tpu.memory_space<vmem>>, %arg4: memref<1x128xf32, #tpu.memory_space<vmem>>, %arg5: memref<8x8xf32, #tpu.memory_space<vmem>>) attributes {dimension_semantics = [#tpu.dimension_semantics<parallel>], iteration_bounds = array<i64: 1>, scalar_prefetch = 0 : i64, scratch_operands = 0 : i64, tpu.core_type = #tpu.core_type<tc>, window_params = [{transform_indices = @transform_0, window_bounds = array<i64: 8, 8, 128>}, {transform_indices = @transform_1, window_bounds = array<i64: 8, 128>}, {pipeline_mode = #tpu.pipeline_mode<synchronous>, transform_indices = @transform_2, window_bounds = array<i64: 128, 128>}, {pipeline_mode = #tpu.pipeline_mode<synchronous>, transform_indices = @transform_3, window_bounds = array<i64: 1, 128>}, {transform_indices = @transform_4, window_bounds = array<i64: 8, 8>}]} {
    %c0 = arith.constant 0 : index
    %c0_0 = arith.constant 0 : index
    %c0_1 = arith.constant 0 : index
    %0 = vector.load %arg1[%c0, %c0_0, %c0_1] : memref<8x8x128xf32, #tpu.memory_space<vmem>>, vector<8x8x128xf32>
    %1 = vector.shape_cast %0 : vector<8x8x128xf32> to vector<64x128xf32>
    %c0_2 = arith.constant 0 : index
    %c0_3 = arith.constant 0 : index
    %2 = vector.load %arg3[%c0_2, %c0_3] : memref<128x128xf32, #tpu.memory_space<vmem>>, vector<128x128xf32>
    %cst = arith.constant dense<0.000000e+00> : vector<64x128xf32>
    %3 = tpu.matmul %1, %2, %cst {dimension_numbers = #tpu.dot_dimension_numbers<[1], [0], [0], [1], [0, 0, 1, 1], [], []>} : vector<64x128xf32>, vector<128x128xf32>, vector<64x128xf32> -> vector<64x128xf32>
    %4 = vector.shape_cast %3 : vector<64x128xf32> to vector<8x8x128xf32>
    %c0_4 = arith.constant 0 : index
    %c0_5 = arith.constant 0 : index
    %5 = vector.load %arg2[%c0_4, %c0_5] : memref<8x128xf32, #tpu.memory_space<vmem>>, vector<8x128xf32>
    %6 = vector.shape_cast %5 : vector<8x128xf32> to vector<1x8x128xf32>
    %7 = vector.broadcast %6 : vector<1x8x128xf32> to vector<8x8x128xf32>
    %8 = arith.addf %4, %7 : vector<8x8x128xf32>
    %cst_6 = arith.constant 0.000000e+00 : f32
    %9 = vector.broadcast %cst_6 : f32 to vector<8x8x128xf32>
    %10 = arith.maximumf %8, %9 : vector<8x8x128xf32>
    %c0_7 = arith.constant 0 : index
    %c0_8 = arith.constant 0 : index
    %11 = vector.load %arg4[%c0_7, %c0_8] : memref<1x128xf32, #tpu.memory_space<vmem>>, vector<1x128xf32>
    %12 = vector.shape_cast %11 : vector<1x128xf32> to vector<1x1x128xf32>
    %13 = vector.broadcast %12 : vector<1x1x128xf32> to vector<8x8x128xf32>
    %14 = arith.mulf %10, %13 : vector<8x8x128xf32>
    %cst_9 = arith.constant dense<0.000000e+00> : vector<8x8xf32>
    %15 = vector.multi_reduction <add>, %14, %cst_9 [2] : vector<8x8x128xf32> to vector<8x8xf32>
    %16 = tpu.transpose %15, [1, 0] : vector<8x8xf32> -> vector<8x8xf32>
    %cst_10 = arith.constant dense<0xFF800000> : vector<8xf32>
    %17 = vector.multi_reduction <maximumf>, %16, %cst_10 [1] : vector<8x8xf32> to vector<8xf32>
    %18 = vector.shape_cast %17 : vector<8xf32> to vector<8x1xf32>
    %19 = vector.broadcast %18 : vector<8x1xf32> to vector<8x8xf32>
    %20 = arith.subf %16, %19 : vector<8x8xf32>
    %21 = math.exp %20 : vector<8x8xf32>
    %cst_11 = arith.constant dense<0.000000e+00> : vector<8xf32>
    %22 = vector.multi_reduction <add>, %21, %cst_11 [1] : vector<8x8xf32> to vector<8xf32>
    %23 = vector.shape_cast %22 : vector<8xf32> to vector<8x1xf32>
    %24 = tpu.reciprocal %23 : vector<8x1xf32> -> vector<8x1xf32>
    %25 = vector.broadcast %24 : vector<8x1xf32> to vector<8x8xf32>
    %26 = arith.mulf %21, %25 : vector<8x8xf32>
    %c0_12 = arith.constant 0 : index
    %c0_13 = arith.constant 0 : index
    %27 = vector.load %arg5[%c0_12, %c0_13] : memref<8x8xf32, #tpu.memory_space<vmem>>, vector<8x8xf32>
    tpu.vector_store %arg5[%c0_12, %c0_13], %26 {strides = array<i32>} : memref<8x8xf32, #tpu.memory_space<vmem>>, vector<8x8xf32>,
    return
  }
  func.func @transform_0(%arg0: i32) -> (i32, i32, i32) {
    %c0_i32 = arith.constant 0 : i32
    %c0_i32_0 = arith.constant 0 : i32
    %c0_i32_1 = arith.constant 0 : i32
    return %c0_i32, %arg0, %c0_i32_0 : i32, i32, i32
  }
  func.func @transform_1(%arg0: i32) -> (i32, i32) {
    %c0_i32 = arith.constant 0 : i32
    %c0_i32_0 = arith.constant 0 : i32
    return %arg0, %c0_i32 : i32, i32
  }
  func.func @transform_2(%arg0: i32) -> (i32, i32) {
    %c0_i32 = arith.constant 0 : i32
    %c0_i32_0 = arith.constant 0 : i32
    %c0_i32_1 = arith.constant 0 : i32
    return %c0_i32, %c0_i32_0 : i32, i32
  }
  func.func @transform_3(%arg0: i32) -> (i32, i32) {
    %c0_i32 = arith.constant 0 : i32
    %c0_i32_0 = arith.constant 0 : i32
    %c0_i32_1 = arith.constant 0 : i32
    return %c0_i32, %c0_i32_0 : i32, i32
  }
  func.func @transform_4(%arg0: i32) -> (i32, i32) {
    %c0_i32 = arith.constant 0 : i32
    %c0_i32_0 = arith.constant 0 : i32
    return %arg0, %c0_i32 : i32, i32
  }
}

module attributes {stable_mosaic.version = 11 : i64} {
  func.func @attention_kernel(%arg0: i32, %arg1: memref<8x8x128xf32, #tpu.memory_space<vmem>>, %arg2: memref<8x128xf32, #tpu.memory_space<vmem>>, %arg3: memref<128x128xf32, #tpu.memory_space<vmem>>, %arg4: memref<1x128xf32, #tpu.memory_space<vmem>>, %arg5: memref<8x8xf32, #tpu.memory_space<vmem>>) attributes {dimension_semantics = [#tpu.dimension_semantics<parallel>], iteration_bounds = array<i64: 1>, scalar_prefetch = 0 : i64, scratch_operands = 0 : i64, tpu.core_type = #tpu.core_type<tc>, window_params = [{transform_indices = @transform_0, window_bounds = array<i64: 8, 8, 128>}, {transform_indices = @transform_1, window_bounds = array<i64: 8, 128>}, {pipeline_mode = #tpu.pipeline_mode<synchronous>, transform_indices = @transform_2, window_bounds = array<i64: 128, 128>}, {pipeline_mode = #tpu.pipeline_mode<synchronous>, transform_indices = @transform_3, window_bounds = array<i64: 1, 128>}, {transform_indices = @transform_4, window_bounds = array<i64: 8, 8>}]} {
    %c0 = arith.constant 0 : index
    %c0_0 = arith.constant 0 : index
    %c0_1 = arith.constant 0 : index
    %0 = vector.load %arg1[%c0, %c0_0, %c0_1] : memref<8x8x128xf32, #tpu.memory_space<vmem>>, vector<8x8x128xf32>
    %1 = vector.shape_cast %0 : vector<8x8x128xf32> to vector<64x128xf32>
    %c0_2 = arith.constant 0 : index
    %c0_3 = arith.constant 0 : index
    %2 = vector.load %arg3[%c0_2, %c0_3] : memref<128x128xf32, #tpu.memory_space<vmem>>, vector<128x128xf32>
    %cst = arith.constant dense<0.000000e+00> : vector<64x128xf32>
    %3 = tpu.matmul %1, %2, %cst {dimension_numbers = #tpu.dot_dimension_numbers<[1], [0], [0], [1], [0, 0, 1, 1], [], []>} : vector<64x128xf32>, vector<128x128xf32>, vector<64x128xf32> -> vector<64x128xf32>
    %4 = vector.shape_cast %3 : vector<64x128xf32> to vector<8x8x128xf32>
    %c0_4 = arith.constant 0 : index
    %c0_5 = arith.constant 0 : index
    %5 = vector.load %arg2[%c0_4, %c0_5] : memref<8x128xf32, #tpu.memory_space<vmem>>, vector<8x128xf32>
    %6 = vector.shape_cast %5 : vector<8x128xf32> to vector<1x8x128xf32>
    %7 = vector.broadcast %6 : vector<1x8x128xf32> to vector<8x8x128xf32>
    %8 = arith.addf %4, %7 : vector<8x8x128xf32>
    %cst_6 = arith.constant 0.000000e+00 : f32
    %9 = vector.broadcast %cst_6 : f32 to vector<8x8x128xf32>
    %10 = arith.maximumf %8, %9 : vector<8x8x128xf32>
    %c0_7 = arith.constant 0 : index
    %c0_8 = arith.constant 0 : index
    %11 = vector.load %arg4[%c0_7, %c0_8] : memref<1x128xf32, #tpu.memory_space<vmem>>, vector<1x128xf32>
    %12 = vector.shape_cast %11 : vector<1x128xf32> to vector<1x1x128xf32>
    %13 = vector.broadcast %12 : vector<1x1x128xf32> to vector<8x8x128xf32>
    %14 = arith.mulf %10, %13 : vector<8x8x128xf32>
    %cst_9 = arith.constant dense<0.000000e+00> : vector<8x8xf32>
    %15 = vector.multi_reduction <add>, %14, %cst_9 [2] : vector<8x8x128xf32> to vector<8x8xf32>
    %16 = tpu.transpose %15, [1, 0] : vector<8x8xf32> -> vector<8x8xf32>
    %cst_10 = arith.constant dense<0xFF800000> : vector<8xf32>
    %17 = vector.multi_reduction <maximumf>, %16, %cst_10 [1] : vector<8x8xf32> to vector<8xf32>
    %18 = vector.shape_cast %17 : vector<8xf32> to vector<8x1xf32>
    %19 = vector.broadcast %18 : vector<8x1xf32> to vector<8x8xf32>
    %20 = arith.subf %16, %19 : vector<8x8xf32>
    %21 = math.exp %20 : vector<8x8xf32>
    %cst_11 = arith.constant dense<0.000000e+00> : vector<8xf32>
    %22 = vector.multi_reduction <add>, %21, %cst_11 [1] : vector<8x8xf32> to vector<8xf32>
    %23 = vector.shape_cast %22 : vector<8xf32> to vector<8x1xf32>
    %24 = tpu.reciprocal %23 : vector<8x1xf32> -> vector<8x1xf32>
    %25 = vector.broadcast %24 : vector<8x1xf32> to vector<8x8xf32>
    %26 = arith.mulf %21, %25 : vector<8x8xf32>
    %c0_12 = arith.constant 0 : index
    %c0_13 = arith.constant 0 : index
    %27 = vector.load %arg5[%c0_12, %c0_13] : memref<8x8xf32, #tpu.memory_space<vmem>>, vector<8x8xf32>
    tpu.vector_store %arg5[%c0_12, %c0_13], %26 {strides = array<i32>} : memref<8x8xf32, #tpu.memory_space<vmem>>, vector<8x8xf32>,
    return
  }
  func.func @transform_0(%arg0: i32) -> (i32, i32, i32) {
    %c0_i32 = arith.constant 0 : i32
    %c0_i32_0 = arith.constant 0 : i32
    %c0_i32_1 = arith.constant 0 : i32
    return %c0_i32, %arg0, %c0_i32_0 : i32, i32, i32
  }
  func.func @transform_1(%arg0: i32) -> (i32, i32) {
    %c0_i32 = arith.constant 0 : i32
    %c0_i32_0 = arith.constant 0 : i32
    return %arg0, %c0_i32 : i32, i32
  }
  func.func @transform_2(%arg0: i32) -> (i32, i32) {
    %c0_i32 = arith.constant 0 : i32
    %c0_i32_0 = arith.constant 0 : i32
    %c0_i32_1 = arith.constant 0 : i32
    return %c0_i32, %c0_i32_0 : i32, i32
  }
  func.func @transform_3(%arg0: i32) -> (i32, i32) {
    %c0_i32 = arith.constant 0 : i32
    %c0_i32_0 = arith.constant 0 : i32
    %c0_i32_1 = arith.constant 0 : i32
    return %c0_i32, %c0_i32_0 : i32, i32
  }
  func.func @transform_4(%arg0: i32) -> (i32, i32) {
    %c0_i32 = arith.constant 0 : i32
    %c0_i32_0 = arith.constant 0 : i32
    return %arg0, %c0_i32 : i32, i32
  }
}

</mosaic_0001>

<bundles_post_ra>
// kernel: tpu_custom_call.1
= control target key start
LH: loop header
LB: loop body
LE: loop exit
PB: predicated region body
PF: predicated region fallthrough
CT: control target
= control target key end

     0   :  { %9 = vsyncpa [#allocation3], 0  ;;  %s493_s0 = inlined_call_operand.hbm [shape: f32[8,8,128], index: 0, kind: input, shape index: {}]   ;;  %s494_s1 = inlined_call_operand.hbm [shape: f32[8,128], index: 1, kind: input, shape index: {}]   ;;  %s495_s2 = inlined_call_operand.hbm [shape: f32[128,128], index: 2, kind: input, shape index: {}]   ;;  %s496_s3 = inlined_call_operand.vmem [shape: f32[1,128], index: 3, kind: input, shape index: {}]   ;;  %s497_s4 = inlined_call_operand.hbm [shape: f32[8,8], index: 4, kind: output, shape index: {}]  }
   0x1   :  { %10 = vsyncpa [#allocation6], 0  ;;  %s30_s17 = sshll.u32 %s494_s1, 4  ;;  %s31_s17 = int_to_ptr.hbm [resolvable:$true] %s30_s17 }
   0x2   :  { %11 = vsyncpa [#allocation4], 0  ;;  %s444_s18 = smov [#allocation5]   ;;  %s16_s22 = sshll.u32 %s493_s0, 4  ;;  %s17_s22 = int_to_ptr.hbm [resolvable:$true] %s16_s22 }
   0x3   :  { %s32_s19 = sshll.u32 %s444_s18, 4  ;;  %s445_s23 = smov [#allocation2]   ;;  %s33_s19 = int_to_ptr.vmem [resolvable:$true] %s32_s19 }
   0x4   :  { %35 = dma.hbm_to_vmem [thread:$0]  %s31_s17, 128, %s33_s19, [#allocation6]  }
   0x5   :  { %s18_s24 = sshll.u32 %s445_s23, 4  ;;  %s446_s25 = smov 128   ;;  %s19_s24 = int_to_ptr.vmem [resolvable:$true] %s18_s24 }
   0x6   :  { %s447_s26 = smov 8   ;;  %s40_s1 = sshll.u32 %s495_s2, 4  ;;  %s41_s1 = int_to_ptr.hbm [resolvable:$true] %s40_s1 }
   0x7   :  { %24 = dma.hbm_to_vmem [thread:$0]  %s17_s22, 1024, %s19_s24, [#allocation3], %s446_s25, %s446_s25, %s447_s26  }
   0x8   :  { %s448_s29 = smov [#allocation7]  }
   0x9   :  { %s42_s30 = sshll.u32 %s448_s29, 4  ;;  %s43_s30 = int_to_ptr.vmem [resolvable:$true] %s42_s30 }
   0xa   :  { %48 = dma.hbm_to_vmem [thread:$0]  %s41_s1, 2048, %s43_s30, [#allocation6], %s446_s25, %s446_s25, %s447_s26  }
   0xb   :  { %438 = dma.done.wait [#allocation3], 1024  }
   0xc   :  { %439 = vsyncadd [#allocation3], 4294966272 }
   0xd   :  { %440 = dma.done.wait [#allocation6], 2176  }
   0xe   :  { %441 = vsyncadd [#allocation6], 4294965120  ;;  %v86_v0 = vld [vmem:[#allocation7 + $0x78] sm:$0xff]  ;;  %v85_v1 = vld [vmem:[#allocation7 + $0x70] sm:$0xff]  ;;  %v181_v59 = vlaneseq  ;;  %vm191_vm0 = vcmask 1041409   ;;  %vm193_vm1 = vcmask 1042434  }
   0xf   :  { %87 = vmatpush.msra.mxu0 %v86_v0  ;;  %283 = vmatpush.msra.mxu2 %v86_v0  ;;  %v84_v2 = vld [vmem:[#allocation7 + $0x68] sm:$0xff]  ;;  %v83_v3 = vld [vmem:[#allocation7 + $0x60] sm:$0xff]  ;;  %v82_v4 = vld [vmem:[#allocation7 + $0x58] sm:$0xff]  ;;  %vm195_vm2 = vcmask 1043459   ;;  %vm197_vm3 = vcmask 1044484   ;;  %vm199_vm4 = vcmask 1045509  }
  0x10   :  { %282 = vmatpush.msra.mxu1 %v86_v0  ;;  %284 = vmatpush.msra.mxu3 %v86_v0  ;;  %v81_v5 = vld [vmem:[#allocation7 + $0x50] sm:$0xff]  ;;  %v80_v6 = vld [vmem:[#allocation7 + $0x48] sm:$0xff]  ;;  %v79_v7 = vld [vmem:[#allocation7 + $0x40] sm:$0xff]  ;;  %v182_v61 = vand.u32 127, %v181_v59  ;;  %vm201_vm5 = vcmask 1046534   ;;  %vm203_vm6 = vcmask 1047559  }
  0x11   :  { %88 = vmatpush.msra.mxu0 %v85_v1  ;;  %286 = vmatpush.msra.mxu2 %v85_v1  ;;  %v78_v8 = vld [vmem:[#allocation7 + $0x38] sm:$0xff]  ;;  %v77_v9 = vld [vmem:[#allocation7 + $0x30] sm:$0xff]  ;;  %v76_v10 = vld [vmem:[#allocation7 + $0x28] sm:$0xff]  ;;  %vm238_vm7 = vcmask 64512   ;;  %s271_s8 = sshll.u32 %s497_s4, 4  ;;  %s272_s8 = int_to_ptr.hbm [resolvable:$true] %s271_s8 }
  0x12   :  { %285 = vmatpush.msra.mxu1 %v85_v1  ;;  %287 = vmatpush.msra.mxu3 %v85_v1  ;;  %v75_v11 = vld [vmem:[#allocation7 + $0x20] sm:$0xff]  ;;  %v74_v12 = vld [vmem:[#allocation7 + $0x18] sm:$0xff]  ;;  %v73_v13 = vld [vmem:[#allocation7 + $0x10] sm:$0xff] }
  0x13   :  { %89 = vmatpush.msra.mxu0 %v84_v2  ;;  %289 = vmatpush.msra.mxu2 %v84_v2  ;;  %v72_v14 = vld [vmem:[#allocation7 + $0x8] sm:$0xff]  ;;  %v71_v15 = vld [vmem:[#allocation7] sm:$0xff]  ;;  %v63_v16 = vld [vmem:[#allocation2] sm:$0xff] }
  0x14   :  { %288 = vmatpush.msra.mxu1 %v84_v2  ;;  %290 = vmatpush.msra.mxu3 %v84_v2  ;;  %v67_v17 = vld [vmem:[#allocation2 + $0x20] sm:$0xff]  ;;  %v65_v18 = vld [vmem:[#allocation2 + $0x10] sm:$0xff]  ;;  %v64_v20 = vld [vmem:[#allocation2 + $0x8] sm:$0xff] }
  0x15   :  { %90 = vmatpush.msra.mxu0 %v83_v3  ;;  %292 = vmatpush.msra.mxu2 %v83_v3  ;;  %v69_v19 = vld [vmem:[#allocation2 + $0x30] sm:$0xff]  ;;  %v68_v21 = vld [vmem:[#allocation2 + $0x28] sm:$0xff]  ;;  %v66_v22 = vld [vmem:[#allocation2 + $0x18] sm:$0xff] }
  0x16   :  { %291 = vmatpush.msra.mxu1 %v83_v3  ;;  %293 = vmatpush.msra.mxu3 %v83_v3  ;;  %v70_v23 = vld [vmem:[#allocation2 + $0x38] sm:$0xff]  ;;  %v128_v24 = vld [vmem:[#allocation5] sm:$0xff] }
  0x17   :  { %91 = vmatpush.msra.mxu0 %v82_v4  ;;  %295 = vmatpush.msra.mxu2 %v82_v4  ;;  %v337_v28 = vld [vmem:[%s496_s3] ss:$0 sm:$0xff]  ;;  %s449_s3 = smov [#allocation8]  }
  0x18   :  { %294 = vmatpush.msra.mxu1 %v82_v4  ;;  %296 = vmatpush.msra.mxu3 %v82_v4  ;;  %s269_s5 = sshll.u32 %s449_s3, 4  ;;  %s270_s5 = int_to_ptr.vmem [resolvable:$true] %s269_s5 }
  0x19   :  { %92 = vmatpush.msra.mxu0 %v81_v5  ;;  %298 = vmatpush.msra.mxu2 %v81_v5 }
  0x1a   :  { %297 = vmatpush.msra.mxu1 %v81_v5  ;;  %299 = vmatpush.msra.mxu3 %v81_v5 }
  0x1b   :  { %93 = vmatpush.msra.mxu0 %v80_v6  ;;  %301 = vmatpush.msra.mxu2 %v80_v6 }
  0x1c   :  { %300 = vmatpush.msra.mxu1 %v80_v6  ;;  %302 = vmatpush.msra.mxu3 %v80_v6 }
  0x1d   :  { %94 = vmatpush.msra.mxu0 %v79_v7  ;;  %304 = vmatpush.msra.mxu2 %v79_v7 }
  0x1e   :  { %303 = vmatpush.msra.mxu1 %v79_v7  ;;  %305 = vmatpush.msra.mxu3 %v79_v7 }
  0x1f   :  { %95 = vmatpush.msra.mxu0 %v78_v8  ;;  %307 = vmatpush.msra.mxu2 %v78_v8 }
  0x20   :  { %306 = vmatpush.msra.mxu1 %v78_v8  ;;  %308 = vmatpush.msra.mxu3 %v78_v8 }
  0x21   :  { %96 = vmatpush.msra.mxu0 %v77_v9  ;;  %310 = vmatpush.msra.mxu2 %v77_v9 }
  0x22   :  { %309 = vmatpush.msra.mxu1 %v77_v9  ;;  %311 = vmatpush.msra.mxu3 %v77_v9 }
  0x23   :  { %97 = vmatpush.msra.mxu0 %v76_v10  ;;  %313 = vmatpush.msra.mxu2 %v76_v10 }
  0x24   :  { %312 = vmatpush.msra.mxu1 %v76_v10  ;;  %314 = vmatpush.msra.mxu3 %v76_v10 }
  0x25   :  { %98 = vmatpush.msra.mxu0 %v75_v11  ;;  %316 = vmatpush.msra.mxu2 %v75_v11 }
  0x26   :  { %315 = vmatpush.msra.mxu1 %v75_v11  ;;  %317 = vmatpush.msra.mxu3 %v75_v11 }
  0x27   :  { %99 = vmatpush.msra.mxu0 %v74_v12  ;;  %319 = vmatpush.msra.mxu2 %v74_v12 }
  0x28   :  { %318 = vmatpush.msra.mxu1 %v74_v12  ;;  %320 = vmatpush.msra.mxu3 %v74_v12 }
  0x29   :  { %100 = vmatpush.msra.mxu0 %v73_v13  ;;  %322 = vmatpush.msra.mxu2 %v73_v13 }
  0x2a   :  { %321 = vmatpush.msra.mxu1 %v73_v13  ;;  %323 = vmatpush.msra.mxu3 %v73_v13 }
  0x2b   :  { %101 = vmatpush.msra.mxu0 %v72_v14  ;;  %325 = vmatpush.msra.mxu2 %v72_v14 }
  0x2c   :  { %324 = vmatpush.msra.mxu1 %v72_v14  ;;  %326 = vmatpush.msra.mxu3 %v72_v14 }
  0x2d   :  { %102 = vmatpush.msra.mxu0 %v71_v15  ;;  %328 = vmatpush.msra.mxu2 %v71_v15 }
  0x2e   :  { %327 = vmatpush.msra.mxu1 %v71_v15  ;;  %103 = vmatmul.f32.vlgmr.msra.gmra.mxu0 %v63_v16 }
  0x2f   :  { %115 = vmatmul.f32.vlgmr.msra.gmra.mxu2 %v67_v17  ;;  %109 = vmatmul.f32.vlgmr.msra.gmra.mxu1 %v65_v18 }
  0x30   :  { %329 = vmatpush.msra.mxu3 %v71_v15 }
  0x31   :  { %121 = vmatmul.f32.vlgmr.msra.gmra.mxu3 %v69_v19 }
  0x36   :  { %106 = vmatmul.f32.gmra.mxu0 %v64_v20 }
  0x37   :  { %118 = vmatmul.f32.gmra.mxu2 %v68_v21  ;;  %112 = vmatmul.f32.gmra.mxu1 %v66_v22 }
  0x39   :  { %124 = vmatmul.f32.gmra.mxu3 %v70_v23 }
  0xab   :  { %v104_v25 = vpop.f32.mrf.mxu0 }
  0xac   :  { %v129_v26 = vadd.f32 %v128_v24, %v104_v25  ;;  %v110_v27 = vpop.f32.mrf.mxu1 }
  0xad   :  { %v131_v29 = vadd.f32 %v128_v24, %v110_v27 }
  0xae   :  { %v137_v30 = vmax.f32 %v129_v26, 0.0 }
  0xaf   :  { %v139_v31 = vmax.f32 %v131_v29, 0.0 }
  0xb0   :  { %v149_v32 = vmul.f32 %v337_v28, %v137_v30 }
  0xb1   :  { %v151_v33 = vmul.f32 %v337_v28, %v139_v31 }
  0xb2   :  { %v116_v34 = vpop.f32.mrf.mxu2  ;;  %157 = vadd.xlane.f32.xlu0 %v149_v32 }
  0xb3   :  { %v133_v35 = vadd.f32 %v128_v24, %v116_v34  ;;  %161 = vadd.xlane.f32.xlu1 %v151_v33  ;;  %v107_v36 = vpop.f32.mrf.mxu0 }
  0xb4   :  { %v130_v37 = vadd.f32 %v128_v24, %v107_v36  ;;  %v113_v38 = vpop.f32.mrf.mxu1  ;;  %v122_v39 = vpop.f32.mrf.mxu3 }
  0xb5   :  { %v141_v40 = vmax.f32 %v133_v35, 0.0  ;;  %v132_v41 = vadd.f32 %v128_v24, %v113_v38  ;;  %v135_v45 = vadd.f32 %v128_v24, %v122_v39 }
  0xb6   :  { %v138_v42 = vmax.f32 %v130_v37, 0.0 }
  0xb7   :  { %v140_v43 = vmax.f32 %v132_v41, 0.0  ;;  %v153_v44 = vmul.f32 %v337_v28, %v141_v40  ;;  %v143_v50 = vmax.f32 %v135_v45, 0.0 }
  0xb8   :  { %v150_v46 = vmul.f32 %v337_v28, %v138_v42 }
  0xb9   :  { %165 = vadd.xlane.f32.xlu2 %v153_v44  ;;  %v152_v47 = vmul.f32 %v337_v28, %v140_v43  ;;  %v155_v56 = vmul.f32 %v337_v28, %v143_v50 }
  0xba   :  { %v119_v48 = vpop.f32.mrf.mxu2  ;;  %159 = vadd.xlane.f32.xlu0 %v150_v46 }
  0xbb   :  { %v134_v49 = vadd.f32 %v128_v24, %v119_v48  ;;  %163 = vadd.xlane.f32.xlu1 %v152_v47 }
  0xbc   :  { %v125_v51 = vpop.f32.mrf.mxu3 }
  0xbd   :  { %v142_v52 = vmax.f32 %v134_v49, 0.0  ;;  %v136_v53 = vadd.f32 %v128_v24, %v125_v51 }
  0xbf   :  { %v144_v54 = vmax.f32 %v136_v53, 0.0  ;;  %v154_v55 = vmul.f32 %v337_v28, %v142_v52 }
  0xc1   :  { %167 = vadd.xlane.f32.xlu2 %v154_v55  ;;  %v156_v57 = vmul.f32 %v337_v28, %v144_v54 }
  0xc2   :  { %169 = vadd.xlane.f32.xlu0 %v155_v56 }
  0xc3   :  { %171 = vadd.xlane.f32.xlu1 %v156_v57 }
 0x125   :  { %v158_v58 = vpop.xlane.xlu0 %157 }
 0x126   :  { %v162_v60 = vpop.xlane.xlu1 %161  ;;  %v183_v0 = vperm.slane %v158_v58, %v182_v61 }
 0x127   :  { %v185_v3 = vperm.slane %v162_v60, %v182_v61 }
 0x12c   :  { %v166_v62 = vpop.xlane.xlu2 %165 }
 0x12d   :  { %v160_v63 = vpop.xlane.xlu0 %159  ;;  %v187_v8 = vperm.slane %v166_v62, %v182_v61 }
 0x12e   :  { %v184_v1 = vperm.slane %v160_v63, %v182_v61  ;;  %v164_v2 = vpop.xlane.xlu1 %163 }
 0x12f   :  { %v186_v4 = vperm.slane %v164_v2, %v182_v61 }
 0x130   :  { %v192_v5 = vsel %vm191_vm0, %v184_v1, %v183_v0 }
 0x131   :  { %v194_v6 = vsel %vm193_vm1, %v185_v3, %v192_v5 }
 0x132   :  { %v196_v7 = vsel %vm195_vm2, %v186_v4, %v194_v6 }
 0x133   :  { %v198_v14 = vsel %vm197_vm3, %v187_v8, %v196_v7 }
 0x134   :  { %v168_v9 = vpop.xlane.xlu2 %167 }
 0x135   :  { %v188_v10 = vperm.slane %v168_v9, %v182_v61  ;;  %v170_v11 = vpop.xlane.xlu0 %169 }
 0x136   :  { %v189_v12 = vperm.slane %v170_v11, %v182_v61  ;;  %v172_v13 = vpop.xlane.xlu1 %171 }
 0x137   :  { %v190_v15 = vperm.slane %v172_v13, %v182_v61  ;;  %v200_v16 = vsel %vm199_vm4, %v188_v10, %v198_v14 }
 0x138   :  { %v202_v17 = vsel %vm201_vm5, %v189_v12, %v200_v16 }
 0x139   :  { %v204_v18 = vsel %vm203_vm6, %v190_v15, %v202_v17 }
 0x13a   :  { %206 = vxpose.xlu2.b32.start.end [1/1] (short) (narrow) %v204_v18, 8 }
 0x1d3   :  { %v222_v19 = vpop.trf.xlu2 }
 0x1d4   :  { %v239_v20 = vsel %vm238_vm7, %v222_v19, -inf }
 0x1d5   :  { %240 = vmax.xlane.f32.xlu0 %v239_v20 }
 0x248   :  { %v241_v21 = vpop.xlane.xlu0 %240 }
 0x249   :  { %v242_v22 = vsub.f32 %v222_v19, %v241_v21 }
 0x24b   :  { %v243_v23 = vmul.f32 1.442695, %v242_v22 }
 0x24d   :  { %338 = vpow2.f32 %v243_v23 }
 0x253   :  { %v339_v24 = vpop.eup %338 }
 0x254   :  { %v245_v25 = vsel %vm238_vm7, %v339_v24, 0.0 }
 0x255   :  { %246 = vadd.xlane.f32.xlu1 %v245_v25 }
 0x2c8   :  { %v247_v26 = vpop.xlane.xlu1 %246 }
 0x2c9   :  { %340 = vrcp.f32 %v247_v26  ;;  %v259_v30 = vand.u32 2147483648, %v247_v26  ;;  %v257_v32 = vand.u32 2147483647, %v247_v26  ;;  %vm253_vm9 = vweird.f32 %v247_v26 }
 0x2cb   :  { %v260_v34 = vor.u32 1.1754944e-38, %v259_v30  ;;  %vm258_vm11 = vcmp.eq.f32.partialorder %v257_v32, 8.507059e+37 }
 0x2cf   :  { %v341_v27 = vpop.eup %340 }
 0x2d0   :  { %v249_v28 = vmul.f32 %v341_v27, %v247_v26  ;;  %vm254_vm8 = vweird.f32 %v341_v27 }
 0x2d1   :  { %vm255_vm10 = vmor %vm253_vm9, %vm254_vm8 }
 0x2d2   :  { %v250_v29 = vsub.f32 1.0, %v249_v28 }
 0x2d4   :  { %v251_v31 = vmul.f32 %v341_v27, %v250_v29 }
 0x2d6   :  { %v252_v33 = vadd.f32 %v341_v27, %v251_v31 }
 0x2d8   :  { %v256_v35 = vsel %vm255_vm10, %v341_v27, %v252_v33 }
 0x2d9   :  { %v261_v36 = vsel %vm258_vm11, %v260_v34, %v256_v35 }
 0x2da   :  { %v262_v37 = vmul.f32 %v339_v24, %v261_v36 }
 0x2dc   :  { %263 = vst.msk [vmem:[#allocation8] sm:$0xff] %vm238_vm7, %v262_v37 }
 0x2dd   :  { %274 = dma.vmem_to_hbm [thread:$0]  %s270_s5, 128, %s272_s8, [#allocation4]  }
 0x2de   :  { %442 = dma.done.wait [#allocation4], 128  }
 0x2df   :  { %443 = vsyncadd [#allocation4], 4294967168 }
 0x2e0   :  { %279 = vsyncpa [#allocation3], 1 }
 0x2e1   :  { %280 = vsyncpa [#allocation6], 1 }
 0x2e2   :  { %281 = vsyncpa [#allocation4], 1 }

// kernel: tpu_custom_call.1
= control target key start
LH: loop header
LB: loop body
LE: loop exit
PB: predicated region body
PF: predicated region fallthrough
CT: control target
= control target key end

     0   :  { %9 = vsyncpa [#allocation3], 0  ;;  %s493_s0 = inlined_call_operand.hbm [shape: f32[8,8,128], index: 0, kind: input, shape index: {}]   ;;  %s494_s1 = inlined_call_operand.hbm [shape: f32[8,128], index: 1, kind: input, shape index: {}]   ;;  %s495_s2 = inlined_call_operand.hbm [shape: f32[128,128], index: 2, kind: input, shape index: {}]   ;;  %s496_s3 = inlined_call_operand.vmem [shape: f32[1,128], index: 3, kind: input, shape index: {}]   ;;  %s497_s4 = inlined_call_operand.hbm [shape: f32[8,8], index: 4, kind: output, shape index: {}]  }
   0x1   :  { %10 = vsyncpa [#allocation6], 0  ;;  %s30_s17 = sshll.u32 %s494_s1, 4  ;;  %s31_s17 = int_to_ptr.hbm [resolvable:$true] %s30_s17 }
   0x2   :  { %11 = vsyncpa [#allocation4], 0  ;;  %s444_s18 = smov [#allocation5]   ;;  %s16_s22 = sshll.u32 %s493_s0, 4  ;;  %s17_s22 = int_to_ptr.hbm [resolvable:$true] %s16_s22 }
   0x3   :  { %s32_s19 = sshll.u32 %s444_s18, 4  ;;  %s445_s23 = smov [#allocation2]   ;;  %s33_s19 = int_to_ptr.vmem [resolvable:$true] %s32_s19 }
   0x4   :  { %35 = dma.hbm_to_vmem [thread:$0]  %s31_s17, 128, %s33_s19, [#allocation6]  }
   0x5   :  { %s18_s24 = sshll.u32 %s445_s23, 4  ;;  %s446_s25 = smov 128   ;;  %s19_s24 = int_to_ptr.vmem [resolvable:$true] %s18_s24 }
   0x6   :  { %s447_s26 = smov 8   ;;  %s40_s1 = sshll.u32 %s495_s2, 4  ;;  %s41_s1 = int_to_ptr.hbm [resolvable:$true] %s40_s1 }
   0x7   :  { %24 = dma.hbm_to_vmem [thread:$0]  %s17_s22, 1024, %s19_s24, [#allocation3], %s446_s25, %s446_s25, %s447_s26  }
   0x8   :  { %s448_s29 = smov [#allocation7]  }
   0x9   :  { %s42_s30 = sshll.u32 %s448_s29, 4  ;;  %s43_s30 = int_to_ptr.vmem [resolvable:$true] %s42_s30 }
   0xa   :  { %48 = dma.hbm_to_vmem [thread:$0]  %s41_s1, 2048, %s43_s30, [#allocation6], %s446_s25, %s446_s25, %s447_s26  }
   0xb   :  { %438 = dma.done.wait [#allocation3], 1024  }
   0xc   :  { %439 = vsyncadd [#allocation3], 4294966272 }
   0xd   :  { %440 = dma.done.wait [#allocation6], 2176  }
   0xe   :  { %441 = vsyncadd [#allocation6], 4294965120  ;;  %v86_v0 = vld [vmem:[#allocation7 + $0x78] sm:$0xff]  ;;  %v85_v1 = vld [vmem:[#allocation7 + $0x70] sm:$0xff]  ;;  %v181_v59 = vlaneseq  ;;  %vm191_vm0 = vcmask 1041409   ;;  %vm193_vm1 = vcmask 1042434  }
   0xf   :  { %87 = vmatpush.msra.mxu0 %v86_v0  ;;  %283 = vmatpush.msra.mxu2 %v86_v0  ;;  %v84_v2 = vld [vmem:[#allocation7 + $0x68] sm:$0xff]  ;;  %v83_v3 = vld [vmem:[#allocation7 + $0x60] sm:$0xff]  ;;  %v82_v4 = vld [vmem:[#allocation7 + $0x58] sm:$0xff]  ;;  %vm195_vm2 = vcmask 1043459   ;;  %vm197_vm3 = vcmask 1044484   ;;  %vm199_vm4 = vcmask 1045509  }
  0x10   :  { %282 = vmatpush.msra.mxu1 %v86_v0  ;;  %284 = vmatpush.msra.mxu3 %v86_v0  ;;  %v81_v5 = vld [vmem:[#allocation7 + $0x50] sm:$0xff]  ;;  %v80_v6 = vld [vmem:[#allocation7 + $0x48] sm:$0xff]  ;;  %v79_v7 = vld [vmem:[#allocation7 + $0x40] sm:$0xff]  ;;  %v182_v61 = vand.u32 127, %v181_v59  ;;  %vm201_vm5 = vcmask 1046534   ;;  %vm203_vm6 = vcmask 1047559  }
  0x11   :  { %88 = vmatpush.msra.mxu0 %v85_v1  ;;  %286 = vmatpush.msra.mxu2 %v85_v1  ;;  %v78_v8 = vld [vmem:[#allocation7 + $0x38] sm:$0xff]  ;;  %v77_v9 = vld [vmem:[#allocation7 + $0x30] sm:$0xff]  ;;  %v76_v10 = vld [vmem:[#allocation7 + $0x28] sm:$0xff]  ;;  %vm238_vm7 = vcmask 64512   ;;  %s271_s8 = sshll.u32 %s497_s4, 4  ;;  %s272_s8 = int_to_ptr.hbm [resolvable:$true] %s271_s8 }
  0x12   :  { %285 = vmatpush.msra.mxu1 %v85_v1  ;;  %287 = vmatpush.msra.mxu3 %v85_v1  ;;  %v75_v11 = vld [vmem:[#allocation7 + $0x20] sm:$0xff]  ;;  %v74_v12 = vld [vmem:[#allocation7 + $0x18] sm:$0xff]  ;;  %v73_v13 = vld [vmem:[#allocation7 + $0x10] sm:$0xff] }
  0x13   :  { %89 = vmatpush.msra.mxu0 %v84_v2  ;;  %289 = vmatpush.msra.mxu2 %v84_v2  ;;  %v72_v14 = vld [vmem:[#allocation7 + $0x8] sm:$0xff]  ;;  %v71_v15 = vld [vmem:[#allocation7] sm:$0xff]  ;;  %v63_v16 = vld [vmem:[#allocation2] sm:$0xff] }
  0x14   :  { %288 = vmatpush.msra.mxu1 %v84_v2  ;;  %290 = vmatpush.msra.mxu3 %v84_v2  ;;  %v67_v17 = vld [vmem:[#allocation2 + $0x20] sm:$0xff]  ;;  %v65_v18 = vld [vmem:[#allocation2 + $0x10] sm:$0xff]  ;;  %v64_v20 = vld [vmem:[#allocation2 + $0x8] sm:$0xff] }
  0x15   :  { %90 = vmatpush.msra.mxu0 %v83_v3  ;;  %292 = vmatpush.msra.mxu2 %v83_v3  ;;  %v69_v19 = vld [vmem:[#allocation2 + $0x30] sm:$0xff]  ;;  %v68_v21 = vld [vmem:[#allocation2 + $0x28] sm:$0xff]  ;;  %v66_v22 = vld [vmem:[#allocation2 + $0x18] sm:$0xff] }
  0x16   :  { %291 = vmatpush.msra.mxu1 %v83_v3  ;;  %293 = vmatpush.msra.mxu3 %v83_v3  ;;  %v70_v23 = vld [vmem:[#allocation2 + $0x38] sm:$0xff]  ;;  %v128_v24 = vld [vmem:[#allocation5] sm:$0xff] }
  0x17   :  { %91 = vmatpush.msra.mxu0 %v82_v4  ;;  %295 = vmatpush.msra.mxu2 %v82_v4  ;;  %v337_v28 = vld [vmem:[%s496_s3] ss:$0 sm:$0xff]  ;;  %s449_s3 = smov [#allocation8]  }
  0x18   :  { %294 = vmatpush.msra.mxu1 %v82_v4  ;;  %296 = vmatpush.msra.mxu3 %v82_v4  ;;  %s269_s5 = sshll.u32 %s449_s3, 4  ;;  %s270_s5 = int_to_ptr.vmem [resolvable:$true] %s269_s5 }
  0x19   :  { %92 = vmatpush.msra.mxu0 %v81_v5  ;;  %298 = vmatpush.msra.mxu2 %v81_v5 }
  0x1a   :  { %297 = vmatpush.msra.mxu1 %v81_v5  ;;  %299 = vmatpush.msra.mxu3 %v81_v5 }
  0x1b   :  { %93 = vmatpush.msra.mxu0 %v80_v6  ;;  %301 = vmatpush.msra.mxu2 %v80_v6 }
  0x1c   :  { %300 = vmatpush.msra.mxu1 %v80_v6  ;;  %302 = vmatpush.msra.mxu3 %v80_v6 }
  0x1d   :  { %94 = vmatpush.msra.mxu0 %v79_v7  ;;  %304 = vmatpush.msra.mxu2 %v79_v7 }
  0x1e   :  { %303 = vmatpush.msra.mxu1 %v79_v7  ;;  %305 = vmatpush.msra.mxu3 %v79_v7 }
  0x1f   :  { %95 = vmatpush.msra.mxu0 %v78_v8  ;;  %307 = vmatpush.msra.mxu2 %v78_v8 }
  0x20   :  { %306 = vmatpush.msra.mxu1 %v78_v8  ;;  %308 = vmatpush.msra.mxu3 %v78_v8 }
  0x21   :  { %96 = vmatpush.msra.mxu0 %v77_v9  ;;  %310 = vmatpush.msra.mxu2 %v77_v9 }
  0x22   :  { %309 = vmatpush.msra.mxu1 %v77_v9  ;;  %311 = vmatpush.msra.mxu3 %v77_v9 }
  0x23   :  { %97 = vmatpush.msra.mxu0 %v76_v10  ;;  %313 = vmatpush.msra.mxu2 %v76_v10 }
  0x24   :  { %312 = vmatpush.msra.mxu1 %v76_v10  ;;  %314 = vmatpush.msra.mxu3 %v76_v10 }
  0x25   :  { %98 = vmatpush.msra.mxu0 %v75_v11  ;;  %316 = vmatpush.msra.mxu2 %v75_v11 }
  0x26   :  { %315 = vmatpush.msra.mxu1 %v75_v11  ;;  %317 = vmatpush.msra.mxu3 %v75_v11 }
  0x27   :  { %99 = vmatpush.msra.mxu0 %v74_v12  ;;  %319 = vmatpush.msra.mxu2 %v74_v12 }
  0x28   :  { %318 = vmatpush.msra.mxu1 %v74_v12  ;;  %320 = vmatpush.msra.mxu3 %v74_v12 }
  0x29   :  { %100 = vmatpush.msra.mxu0 %v73_v13  ;;  %322 = vmatpush.msra.mxu2 %v73_v13 }
  0x2a   :  { %321 = vmatpush.msra.mxu1 %v73_v13  ;;  %323 = vmatpush.msra.mxu3 %v73_v13 }
  0x2b   :  { %101 = vmatpush.msra.mxu0 %v72_v14  ;;  %325 = vmatpush.msra.mxu2 %v72_v14 }
  0x2c   :  { %324 = vmatpush.msra.mxu1 %v72_v14  ;;  %326 = vmatpush.msra.mxu3 %v72_v14 }
  0x2d   :  { %102 = vmatpush.msra.mxu0 %v71_v15  ;;  %328 = vmatpush.msra.mxu2 %v71_v15 }
  0x2e   :  { %327 = vmatpush.msra.mxu1 %v71_v15  ;;  %103 = vmatmul.f32.vlgmr.msra.gmra.mxu0 %v63_v16 }
  0x2f   :  { %115 = vmatmul.f32.vlgmr.msra.gmra.mxu2 %v67_v17  ;;  %109 = vmatmul.f32.vlgmr.msra.gmra.mxu1 %v65_v18 }
  0x30   :  { %329 = vmatpush.msra.mxu3 %v71_v15 }
  0x31   :  { %121 = vmatmul.f32.vlgmr.msra.gmra.mxu3 %v69_v19 }
  0x36   :  { %106 = vmatmul.f32.gmra.mxu0 %v64_v20 }
  0x37   :  { %118 = vmatmul.f32.gmra.mxu2 %v68_v21  ;;  %112 = vmatmul.f32.gmra.mxu1 %v66_v22 }
  0x39   :  { %124 = vmatmul.f32.gmra.mxu3 %v70_v23 }
  0xab   :  { %v104_v25 = vpop.f32.mrf.mxu0 }
  0xac   :  { %v129_v26 = vadd.f32 %v128_v24, %v104_v25  ;;  %v110_v27 = vpop.f32.mrf.mxu1 }
  0xad   :  { %v131_v29 = vadd.f32 %v128_v24, %v110_v27 }
  0xae   :  { %v137_v30 = vmax.f32 %v129_v26, 0.0 }
  0xaf   :  { %v139_v31 = vmax.f32 %v131_v29, 0.0 }
  0xb0   :  { %v149_v32 = vmul.f32 %v337_v28, %v137_v30 }
  0xb1   :  { %v151_v33 = vmul.f32 %v337_v28, %v139_v31 }
  0xb2   :  { %v116_v34 = vpop.f32.mrf.mxu2  ;;  %157 = vadd.xlane.f32.xlu0 %v149_v32 }
  0xb3   :  { %v133_v35 = vadd.f32 %v128_v24, %v116_v34  ;;  %161 = vadd.xlane.f32.xlu1 %v151_v33  ;;  %v107_v36 = vpop.f32.mrf.mxu0 }
  0xb4   :  { %v130_v37 = vadd.f32 %v128_v24, %v107_v36  ;;  %v113_v38 = vpop.f32.mrf.mxu1  ;;  %v122_v39 = vpop.f32.mrf.mxu3 }
  0xb5   :  { %v141_v40 = vmax.f32 %v133_v35, 0.0  ;;  %v132_v41 = vadd.f32 %v128_v24, %v113_v38  ;;  %v135_v45 = vadd.f32 %v128_v24, %v122_v39 }
  0xb6   :  { %v138_v42 = vmax.f32 %v130_v37, 0.0 }
  0xb7   :  { %v140_v43 = vmax.f32 %v132_v41, 0.0  ;;  %v153_v44 = vmul.f32 %v337_v28, %v141_v40  ;;  %v143_v50 = vmax.f32 %v135_v45, 0.0 }
  0xb8   :  { %v150_v46 = vmul.f32 %v337_v28, %v138_v42 }
  0xb9   :  { %165 = vadd.xlane.f32.xlu2 %v153_v44  ;;  %v152_v47 = vmul.f32 %v337_v28, %v140_v43  ;;  %v155_v56 = vmul.f32 %v337_v28, %v143_v50 }
  0xba   :  { %v119_v48 = vpop.f32.mrf.mxu2  ;;  %159 = vadd.xlane.f32.xlu0 %v150_v46 }
  0xbb   :  { %v134_v49 = vadd.f32 %v128_v24, %v119_v48  ;;  %163 = vadd.xlane.f32.xlu1 %v152_v47 }
  0xbc   :  { %v125_v51 = vpop.f32.mrf.mxu3 }
  0xbd   :  { %v142_v52 = vmax.f32 %v134_v49, 0.0  ;;  %v136_v53 = vadd.f32 %v128_v24, %v125_v51 }
  0xbf   :  { %v144_v54 = vmax.f32 %v136_v53, 0.0  ;;  %v154_v55 = vmul.f32 %v337_v28, %v142_v52 }
  0xc1   :  { %167 = vadd.xlane.f32.xlu2 %v154_v55  ;;  %v156_v57 = vmul.f32 %v337_v28, %v144_v54 }
  0xc2   :  { %169 = vadd.xlane.f32.xlu0 %v155_v56 }
  0xc3   :  { %171 = vadd.xlane.f32.xlu1 %v156_v57 }
 0x125   :  { %v158_v58 = vpop.xlane.xlu0 %157 }
 0x126   :  { %v162_v60 = vpop.xlane.xlu1 %161  ;;  %v183_v0 = vperm.slane %v158_v58, %v182_v61 }
 0x127   :  { %v185_v3 = vperm.slane %v162_v60, %v182_v61 }
 0x12c   :  { %v166_v62 = vpop.xlane.xlu2 %165 }
 0x12d   :  { %v160_v63 = vpop.xlane.xlu0 %159  ;;  %v187_v8 = vperm.slane %v166_v62, %v182_v61 }
 0x12e   :  { %v184_v1 = vperm.slane %v160_v63, %v182_v61  ;;  %v164_v2 = vpop.xlane.xlu1 %163 }
 0x12f   :  { %v186_v4 = vperm.slane %v164_v2, %v182_v61 }
 0x130   :  { %v192_v5 = vsel %vm191_vm0, %v184_v1, %v183_v0 }
 0x131   :  { %v194_v6 = vsel %vm193_vm1, %v185_v3, %v192_v5 }
 0x132   :  { %v196_v7 = vsel %vm195_vm2, %v186_v4, %v194_v6 }
 0x133   :  { %v198_v14 = vsel %vm197_vm3, %v187_v8, %v196_v7 }
 0x134   :  { %v168_v9 = vpop.xlane.xlu2 %167 }
 0x135   :  { %v188_v10 = vperm.slane %v168_v9, %v182_v61  ;;  %v170_v11 = vpop.xlane.xlu0 %169 }
 0x136   :  { %v189_v12 = vperm.slane %v170_v11, %v182_v61  ;;  %v172_v13 = vpop.xlane.xlu1 %171 }
 0x137   :  { %v190_v15 = vperm.slane %v172_v13, %v182_v61  ;;  %v200_v16 = vsel %vm199_vm4, %v188_v10, %v198_v14 }
 0x138   :  { %v202_v17 = vsel %vm201_vm5, %v189_v12, %v200_v16 }
 0x139   :  { %v204_v18 = vsel %vm203_vm6, %v190_v15, %v202_v17 }
 0x13a   :  { %206 = vxpose.xlu2.b32.start.end [1/1] (short) (narrow) %v204_v18, 8 }
 0x1d3   :  { %v222_v19 = vpop.trf.xlu2 }
 0x1d4   :  { %v239_v20 = vsel %vm238_vm7, %v222_v19, -inf }
 0x1d5   :  { %240 = vmax.xlane.f32.xlu0 %v239_v20 }
 0x248   :  { %v241_v21 = vpop.xlane.xlu0 %240 }
 0x249   :  { %v242_v22 = vsub.f32 %v222_v19, %v241_v21 }
 0x24b   :  { %v243_v23 = vmul.f32 1.442695, %v242_v22 }
 0x24d   :  { %338 = vpow2.f32 %v243_v23 }
 0x253   :  { %v339_v24 = vpop.eup %338 }
 0x254   :  { %v245_v25 = vsel %vm238_vm7, %v339_v24, 0.0 }
 0x255   :  { %246 = vadd.xlane.f32.xlu1 %v245_v25 }
 0x2c8   :  { %v247_v26 = vpop.xlane.xlu1 %246 }
 0x2c9   :  { %340 = vrcp.f32 %v247_v26  ;;  %v259_v30 = vand.u32 2147483648, %v247_v26  ;;  %v257_v32 = vand.u32 2147483647, %v247_v26  ;;  %vm253_vm9 = vweird.f32 %v247_v26 }
 0x2cb   :  { %v260_v34 = vor.u32 1.1754944e-38, %v259_v30  ;;  %vm258_vm11 = vcmp.eq.f32.partialorder %v257_v32, 8.507059e+37 }
 0x2cf   :  { %v341_v27 = vpop.eup %340 }
 0x2d0   :  { %v249_v28 = vmul.f32 %v341_v27, %v247_v26  ;;  %vm254_vm8 = vweird.f32 %v341_v27 }
 0x2d1   :  { %vm255_vm10 = vmor %vm253_vm9, %vm254_vm8 }
 0x2d2   :  { %v250_v29 = vsub.f32 1.0, %v249_v28 }
 0x2d4   :  { %v251_v31 = vmul.f32 %v341_v27, %v250_v29 }
 0x2d6   :  { %v252_v33 = vadd.f32 %v341_v27, %v251_v31 }
 0x2d8   :  { %v256_v35 = vsel %vm255_vm10, %v341_v27, %v252_v33 }
 0x2d9   :  { %v261_v36 = vsel %vm258_vm11, %v260_v34, %v256_v35 }
 0x2da   :  { %v262_v37 = vmul.f32 %v339_v24, %v261_v36 }
 0x2dc   :  { %263 = vst.msk [vmem:[#allocation8] sm:$0xff] %vm238_vm7, %v262_v37 }
 0x2dd   :  { %274 = dma.vmem_to_hbm [thread:$0]  %s270_s5, 128, %s272_s8, [#allocation4]  }
 0x2de   :  { %442 = dma.done.wait [#allocation4], 128  }
 0x2df   :  { %443 = vsyncadd [#allocation4], 4294967168 }
 0x2e0   :  { %279 = vsyncpa [#allocation3], 1 }
 0x2e1   :  { %280 = vsyncpa [#allocation6], 1 }
 0x2e2   :  { %281 = vsyncpa [#allocation4], 1 }

</bundles_post_ra>
